<compile_context>
chip_gen: v5e
topology: v5e:2x2
jax: 0.10.0
libtpu: 0.0.40
codegen_flags: <defaults>
</compile_context>

<pallas_src>
import math

import jax
import jax.numpy as jnp
from jax.experimental import pallas as pl
from jax.experimental.pallas import tpu as pltpu

_LANE = 128
_SMALL_TOTAL = 1024          # below ~1 f32 vreg the XLA reshape/copy is strictly cheaper
_MAX_INFLIGHT_DMA = 4        # outstanding HBM->HBM copies in the memcpy fallback


# --------------------------------------------------------------------------- #
# Kernels
# --------------------------------------------------------------------------- #
def _slab_copy_kernel(x_ref, o_ref):
    """Identity copy of one lane-dense (row_tile, cols) slab."""
    o_ref[...] = x_ref[...]


def _make_dma_memcpy_kernel(offsets, sizes):
    """Chunked HBM->HBM memcpy; offsets/sizes are static Python ints."""
    n = len(sizes)

    def kernel(x_ref, o_ref, sems):
        # Issue all chunk copies (up to _MAX_INFLIGHT_DMA outstanding), then wait.
        for i in range(n):
            pltpu.make_async_copy(
                x_ref.at[pl.ds(offsets[i], sizes[i])],
                o_ref.at[pl.ds(offsets[i], sizes[i])],
                sems.at[i],
            ).start()
        for i in range(n):
            pltpu.make_async_copy(
                x_ref.at[pl.ds(offsets[i], sizes[i])],
                o_ref.at[pl.ds(offsets[i], sizes[i])],
                sems.at[i],
            ).wait()

    return kernel


# --------------------------------------------------------------------------- #
# Sizing helpers (all trace-time Python)
# --------------------------------------------------------------------------- #
def _dtype_bits(dtype) -> int:
    d = jnp.dtype(dtype)
    try:
        return int(jnp.finfo(d).bits)
    except Exception:
        pass
    try:
        return int(jnp.iinfo(d).bits)
    except Exception:
        return int(d.itemsize) * 8


def _vmem_budget_bytes() -> int:
    """Scoped-VMEM budget: half the physical VMEM, capped at 64 MiB.

    v5e/v6e (128 MiB physical) -> 64 MiB; v7x (64 MiB per TC) -> 32 MiB.
    Falls back to the conservative (v7x) numbers if the query is unavailable.
    """
    cap = 64 * 1024 * 1024
    try:
        cap = int(pltpu.get_tpu_info().vmem_capacity_bytes)
    except Exception:
        pass
    return min(max(cap // 2, 16 * 1024 * 1024), 64 * 1024 * 1024)


def _choose_cols(total: int, pack: int):
    """Pick a lane width (multiple of 128) for the flat (rows, cols) slab."""
    candidates = (8192, 4096, 2048, 1024, 512, 256, 128)
    for c in candidates:                      # rows a multiple of the packed sublane count
        if total % (c * pack) == 0:
            return c
    for c in candidates:                      # rows at least 8-aligned (tileable)
        if total % (c * 8) == 0:
            return c
    for c in candidates:                      # any even split (rows may not be 8-aligned)
        if total % c == 0:
            return c
    return None


def _pick_row_tile(rows: int, pack: int, target_rows: int) -> int:
    """Largest row tile that divides `rows` exactly (no ragged/masked final
    block), is sublane aligned, fits the per-block budget, and -- when
    possible -- yields an EVEN block count so v7x's two TensorCores split the
    grid evenly."""
    step = pack if rows % pack == 0 else 8
    hi = min(rows, max(step, (max(target_rows, step) // step) * step))
    best_any = None
    t = hi
    while t >= step:
        if rows % t == 0:
            if best_any is None:
                best_any = t
            if (rows // t) % 2 == 0:
                return t                      # largest even-count tile within budget
        t -= step
    return best_any if best_any is not None else rows


# --------------------------------------------------------------------------- #
# Copy paths
# --------------------------------------------------------------------------- #
def _flatten_slab(flat, total, dtype, itemsize, pack):
    """Lane-dense (rows, cols) slab copy via BlockSpec auto-pipelining."""
    cols = _choose_cols(total, pack)
    if cols is None:
        return None
    rows = total // cols

    vmem_limit = _vmem_budget_bytes()
    block_bytes = max(1 << 20, vmem_limit // 8)   # 2-in + 2-out live buffers = half budget
    target_rows = max(8, (block_bytes // (cols * itemsize)) // 8 * 8)

    if rows % 8 != 0:
        # Rare layout (rows not sublane aligned): only legal as one full block.
        if rows * cols * itemsize > block_bytes:
            return None
        row_tile = rows
    else:
        row_tile = _pick_row_tile(rows, pack, target_rows)
    grid_rows = rows // row_tile                  # exact by construction

    slab = flat.reshape(rows, cols)               # metadata-only view
    out = pl.pallas_call(
        _slab_copy_kernel,
        out_shape=jax.ShapeDtypeStruct((rows, cols), dtype),
        grid=(grid_rows,),
        in_specs=[pl.BlockSpec((row_tile, cols), lambda i: (i, 0))],
        out_specs=pl.BlockSpec((row_tile, cols), lambda i: (i, 0)),
        compiler_params=pltpu.CompilerParams(
            dimension_semantics=("parallel",),
            vmem_limit_bytes=vmem_limit,
        ),
        cost_estimate=pl.CostEstimate(
            flops=0, transcendentals=0, bytes_accessed=2 * total * itemsize),
    )(slab)
    return out.reshape(-1)


def _flatten_dma(flat, total, dtype, itemsize):
    """Chunked HBM->HBM DMA memcpy (no VMEM round trip, no alignment needs)."""
    n_chunks = int(min(_MAX_INFLIGHT_DMA, max(1, total // (1 << 18))))
    if n_chunks > 1:
        base = (total // n_chunks) // _LANE * _LANE
        sizes = [base] * (n_chunks - 1) + [total - base * (n_chunks - 1)]
    else:
        sizes = [total]
    offsets, off = [], 0
    for s in sizes:
        offsets.append(off)
        off += s

    kernel = _make_dma_memcpy_kernel(tuple(offsets), tuple(sizes))
    return pl.pallas_call(
        kernel,
        out_shape=jax.ShapeDtypeStruct((total,), dtype),
        in_specs=[pl.BlockSpec(memory_space=pl.ANY)],
        out_specs=pl.BlockSpec(memory_space=pl.ANY),
        scratch_shapes=[pltpu.SemaphoreType.DMA((n_chunks,))],
        compiler_params=pltpu.CompilerParams(has_side_effects=True),
        cost_estimate=pl.CostEstimate(
            flops=0, transcendentals=0, bytes_accessed=2 * total * itemsize),
    )(flat)


# --------------------------------------------------------------------------- #
# Public wrapper (== Flatten.forward)
# --------------------------------------------------------------------------- #
def flatten_pallas(x, keep_batch_dim: bool = True, materialize: bool = True):
    """Pallas equivalent of Flatten.forward.

    materialize=False returns the metadata-only reshape (zero HBM traffic, the
    recommended production path).  materialize=True routes the data through a
    Pallas copy kernel (slab pipeline or HBM->HBM DMA memcpy).
    """
    n = x.shape[0] if x.ndim >= 1 else 1
    f = int(math.prod(x.shape[1:])) if x.ndim >= 1 else 1
    total = int(math.prod(x.shape)) if x.ndim >= 1 else 1
    out_shape = (n, f) if keep_batch_dim else (total,)

    bits = _dtype_bits(x.dtype)
    if (not materialize) or total < _SMALL_TOTAL or bits < 8:
        # Metadata-only view change: free, and the right call for tiny tensors.
        # TODO(synk): dedicated packed copy path for sub-byte dtypes (int4/fp4).
        return x.reshape(out_shape)

    itemsize = bits // 8
    pack = max(8, 8 * (32 // bits))     # packed sublanes per vreg tile
    flat = x.reshape(-1)                # metadata-only view of contiguous input

    out_flat = None
    if total % _LANE == 0:
        out_flat = _flatten_slab(flat, total, x.dtype, itemsize, pack)
    if out_flat is None:
        # Flat size not lane-aligned (or awkward slab layout): chunked
        # HBM->HBM DMA memcpy -- data touched exactly once, no pad/slice.
        out_flat = _flatten_dma(flat, total, x.dtype, itemsize)
    return out_flat.reshape(out_shape)


if __name__ == "__main__":
    key = jax.random.PRNGKey(0)

    # Small NCHW input consistent with the module's conv-net use.
    x = jax.random.normal(key, (2, 4, 16, 16), dtype=jnp.float32)

    # keep_batch_dim=True -> (N, C*H*W); tiled slab kernel path.
    y = jax.block_until_ready(flatten_pallas(x, keep_batch_dim=True))
    ref = x.reshape(x.shape[0], -1)
    assert y.shape == (2, 4 * 16 * 16), y.shape
    assert y.dtype == x.dtype
    assert bool(jnp.all(y == ref)), "mismatch (keep_batch_dim=True)"

    # keep_batch_dim=False -> (N*C*H*W,)
    y_flat = jax.block_until_ready(flatten_pallas(x, keep_batch_dim=False))
    assert y_flat.shape == (2 * 4 * 16 * 16,), y_flat.shape
    assert bool(jnp.all(y_flat == x.reshape(-1))), "mismatch (keep_batch_dim=False)"

    # bf16 multi-row slab path.
    x_big = jax.random.normal(key, (4, 8, 32, 32), dtype=jnp.bfloat16)
    y_big = jax.block_until_ready(flatten_pallas(x_big, keep_batch_dim=False))
    assert bool(jnp.all(y_big == x_big.reshape(-1))), "mismatch (bf16)"

    # Flat size not a multiple of 128 -> HBM->HBM DMA memcpy path.
    x_odd = jax.random.normal(key, (3, 5, 9, 13), dtype=jnp.float32)  # 1755 elems
    y_odd = jax.block_until_ready(flatten_pallas(x_odd, keep_batch_dim=True))
    assert bool(jnp.all(y_odd == x_odd.reshape(3, -1))), "mismatch (odd shape)"

    # Tiny input -> metadata-only short circuit (no kernel launch).
    x_tiny = jax.random.normal(key, (2, 3, 5, 7), dtype=jnp.float32)
    y_tiny = jax.block_until_ready(flatten_pallas(x_tiny, keep_batch_dim=False))
    assert bool(jnp.all(y_tiny == x_tiny.reshape(-1))), "mismatch (tiny shape)"

    print("KERNEL_OK")
</pallas_src>

<mosaic_0001>
module attributes {stable_mosaic.version = 11 : i64} {
  func.func @_slab_copy_kernel(%arg0: i32, %arg1: memref<8x256xf32, #tpu.memory_space<vmem>>, %arg2: memref<8x256xf32, #tpu.memory_space<vmem>>) attributes {dimension_semantics = [#tpu.dimension_semantics<parallel>], iteration_bounds = array<i64: 1>, scalar_prefetch = 0 : i64, scratch_operands = 0 : i64, tpu.core_type = #tpu.core_type<tc>, window_params = [{transform_indices = @transform_0, window_bounds = array<i64: 8, 256>}, {transform_indices = @transform_1, window_bounds = array<i64: 8, 256>}]} {
    %c0 = arith.constant 0 : index
    %c0_0 = arith.constant 0 : index
    %0 = vector.load %arg1[%c0, %c0_0] : memref<8x256xf32, #tpu.memory_space<vmem>>, vector<8x256xf32>
    %c0_1 = arith.constant 0 : index
    %c0_2 = arith.constant 0 : index
    %1 = vector.load %arg2[%c0_1, %c0_2] : memref<8x256xf32, #tpu.memory_space<vmem>>, vector<8x256xf32>
    tpu.vector_store %arg2[%c0_1, %c0_2], %0 {strides = array<i32>} : memref<8x256xf32, #tpu.memory_space<vmem>>, vector<8x256xf32>,
    return
  }
  func.func @transform_0(%arg0: i32) -> (i32, i32) {
    %c0_i32 = arith.constant 0 : i32
    %c0_i32_0 = arith.constant 0 : i32
    return %arg0, %c0_i32 : i32, i32
  }
  func.func @transform_1(%arg0: i32) -> (i32, i32) {
    %c0_i32 = arith.constant 0 : i32
    %c0_i32_0 = arith.constant 0 : i32
    return %arg0, %c0_i32 : i32, i32
  }
}

</mosaic_0001>

<bundles_post_ra>
// kernel: tpu_custom_call.1
= control target key start
LH: loop header
LB: loop body
LE: loop exit
PB: predicated region body
PF: predicated region fallthrough
CT: control target
= control target key end

     0   :  { %6 = vsyncpa [#allocation3], 0  ;;  %s116_s0 = inlined_call_operand.hbm [shape: f32[8,256], index: 0, kind: input, shape index: {}]   ;;  %s117_s1 = inlined_call_operand.hbm [shape: f32[8,256], index: 1, kind: output, shape index: {}]  }
   0x1   :  { %7 = vsyncpa [#allocation4], 0  ;;  %s13_s8 = sshll.u32 %s116_s0, 4  ;;  %s98_s9 = smov [#allocation2]   ;;  %s14_s8 = int_to_ptr.hbm [resolvable:$true] %s13_s8 }
   0x2   :  { %s15_s10 = sshll.u32 %s98_s9, 4  ;;  %s16_s10 = int_to_ptr.vmem [resolvable:$true] %s15_s10 }
   0x3   :  { %18 = dma.hbm_to_vmem [thread:$0]  %s14_s8, 256, %s16_s10, [#allocation3]  }
   0x4   :  { %94 = dma.done.wait [#allocation3], 256  }
   0x5   :  { %95 = vsyncadd [#allocation3], 4294967040  ;;  %s99_s11 = smov [#allocation5]   ;;  %s34_s15 = sshll.u32 %s117_s1, 4  ;;  %v23_v0 = vld [vmem:[#allocation2] sm:$0xff]  ;;  %v24_v1 = vld [vmem:[#allocation2 + $0x8] sm:$0xff]  ;;  %s35_s15 = int_to_ptr.hbm [resolvable:$true] %s34_s15 }
   0x6   :  { %s32_s12 = sshll.u32 %s99_s11, 4  ;;  %25 = vst [vmem:[#allocation5] sm:$0xff] %v23_v0  ;;  %s33_s12 = int_to_ptr.vmem [resolvable:$true] %s32_s12 }
   0x7   :  { %26 = vst [vmem:[#allocation5 + $0x8] sm:$0xff] %v24_v1 }
   0x8   :  { %37 = dma.vmem_to_hbm [thread:$0]  %s33_s12, 256, %s35_s15, [#allocation4]  }
   0x9   :  { %96 = dma.done.wait [#allocation4], 256  }
   0xa   :  { %97 = vsyncadd [#allocation4], 4294967040 }
   0xb   :  { %42 = vsyncpa [#allocation3], 1 }
   0xc   :  { %43 = vsyncpa [#allocation4], 1 }

</bundles_post_ra>
